<compile_context>
chip_gen: v6e
topology: v6e:2x2x1
jax: 0.10.0
libtpu: 0.0.40
codegen_flags: <defaults>
</compile_context>

<pallas_src>
import functools

import jax
import jax.numpy as jnp
from jax import lax
from jax.experimental import pallas as pl
from jax.experimental.pallas import tpu as pltpu


def _label_smoothing_kernel(x_ref, t_ref, out_ref,
                            m_sc, se_sc, acc_sc,
                            *, confidence, smoothing, c_total, block_c,
                            class_padded):
    j = pl.program_id(1)
    nj = pl.num_programs(1)

    @pl.when(j == 0)
    def _():
        m_sc[...] = jnp.full_like(m_sc, -jnp.inf)
        se_sc[...] = jnp.zeros_like(se_sc)
        acc_sc[...] = jnp.zeros_like(acc_sc)

    x = x_ref[...].astype(jnp.float32)             # (TM, TC) -- f32 math in-reg
    t_local = t_ref[...] - j * block_c             # (TM, 1)  shifted target idx
    local_col = lax.broadcasted_iota(jnp.int32, x.shape, 1)   # loop-invariant

    sm_over_c = smoothing / c_total
    w_hit = confidence + sm_over_c

    def update(x_lse, x_lin):
        # Online logsumexp over the class tiles.
        m_old = m_sc[...]
        m_new = jnp.maximum(m_old, jnp.max(x_lse, axis=-1, keepdims=True))
        alpha = jnp.exp(m_old - m_new)             # == 0 on the first tile
        se_sc[...] = alpha * se_sc[...] + jnp.sum(jnp.exp(x_lse - m_new),
                                                  axis=-1, keepdims=True)
        m_sc[...] = m_new
        # Fused linear term:  acc += sum_k x_k * (smoothing/C + conf*[k==t])
        w = jnp.where(local_col == t_local, w_hit, sm_over_c)
        acc_sc[...] += jnp.sum(x_lin * w, axis=-1, keepdims=True)

    if not class_padded:
        # Fast path: every class tile is fully populated -> no mask at all.
        update(x, x)
    else:
        # Only the LAST class tile can hold padded columns.
        @pl.when(j < nj - 1)
        def _():
            update(x, x)

        @pl.when(j == nj - 1)
        def _():
            valid = local_col < (c_total - j * block_c)
            # Selects (not multiply-by-onehot) so Inf/NaN garbage in the block
            # padding cannot poison valid rows via 0*Inf.
            update(jnp.where(valid, x, -jnp.inf), jnp.where(valid, x, 0.0))

    @pl.when(j == nj - 1)
    def _():
        lse = m_sc[...] + jnp.log(se_sc[...])      # (TM, 1)
        out_ref[...] = lse - acc_sc[...]


def _round_up(v, m):
    return ((v + m - 1) // m) * m


def label_smoothing_loss(x, target, smoothing=0.1, *, block_m=None, block_c=None):
    """x: (N, C) float (f32/bf16), target: (N,) int -> scalar f32 mean loss."""
    n, c = x.shape
    confidence = 1.0 - smoothing
    t2d = target.astype(jnp.int32).reshape(n, 1)

    if block_m is None:
        # Sublane-aligned; keep >= 2 batch tiles so the "parallel" axis can be
        # sharded across both TensorCores on v7x.
        block_m = min(256, _round_up(pl.cdiv(n, 2), 16))
    if block_c is None:
        # Full C in one tile when it fits comfortably; otherwise large
        # 128-aligned class tiles (~2-8 MiB logits tiles -> HBM roofline).
        block_c = c if c <= 8192 else 8192

    grid = (pl.cdiv(n, block_m), pl.cdiv(c, block_c))
    class_padded = (c % block_c) != 0

    # VMEM budget from the actual double-buffered footprint + headroom
    # (portable to v7x's 64 MiB VMEM), not a hard-coded fraction of physical.
    x_bytes = 2 * block_m * block_c * jnp.dtype(x.dtype).itemsize
    other_bytes = 2 * block_m * 4 * 2 + 3 * block_m * 4      # targets/out/scratch
    vmem_limit = max(8 * 1024 * 1024,
                     int(1.5 * (x_bytes + other_bytes)) + (2 << 20))

    kernel = functools.partial(
        _label_smoothing_kernel,
        confidence=confidence, smoothing=smoothing,
        c_total=c, block_c=block_c, class_padded=class_padded)

    per_row = pl.pallas_call(
        kernel,
        out_shape=jax.ShapeDtypeStruct((n, 1), jnp.float32),
        grid_spec=pltpu.PrefetchScalarGridSpec(
            num_scalar_prefetch=0,
            grid=grid,
            in_specs=[
                pl.BlockSpec((block_m, block_c), lambda i, j: (i, j)),  # logits
                pl.BlockSpec((block_m, 1), lambda i, j: (i, 0)),        # targets
            ],
            out_specs=pl.BlockSpec((block_m, 1), lambda i, j: (i, 0)),  # per-row loss
            scratch_shapes=[pltpu.VMEM((block_m, 1), jnp.float32)] * 3,
        ),
        compiler_params=pltpu.CompilerParams(
            dimension_semantics=("parallel", "arbitrary"),
            vmem_limit_bytes=vmem_limit,
        ),
    )(x, t2d)        # logits streamed in their native dtype (no wrapper upcast)

    return jnp.mean(per_row[:, 0])


def _reference(x, target, smoothing):
    confidence = 1.0 - smoothing
    lp = jax.nn.log_softmax(x.astype(jnp.float32), axis=-1)
    nll = -jnp.take_along_axis(lp, target[:, None].astype(jnp.int32), axis=-1)[:, 0]
    smooth = -jnp.mean(lp, axis=-1)
    return jnp.mean(confidence * nll + smoothing * smooth)


if __name__ == "__main__":
    key = jax.random.PRNGKey(0)
    k1, k2, k3, k4, k5, k6 = jax.random.split(key, 6)
    smoothing = 0.1

    # --- Test 1: small f32 case, single-tile grid, no class padding ----------
    N, C = 8, 32
    x = jax.random.normal(k1, (N, C), dtype=jnp.float32)
    target = jax.random.randint(k2, (N,), 0, C, dtype=jnp.int32)

    loss = jax.block_until_ready(label_smoothing_loss(x, target, smoothing))
    ref = _reference(x, target, smoothing)
    assert jnp.allclose(loss, ref, atol=1e-5, rtol=1e-5), (loss, ref)

    # --- Test 2: bf16 transport, class + batch remainders (masked last tile) -
    N2, C2 = 24, 160
    x2 = jax.random.normal(k3, (N2, C2), dtype=jnp.float32).astype(jnp.bfloat16)
    target2 = jax.random.randint(k4, (N2,), 0, C2, dtype=jnp.int32)

    loss2 = jax.block_until_ready(
        label_smoothing_loss(x2, target2, smoothing, block_m=16, block_c=128))
    ref2 = _reference(x2, target2, smoothing)
    assert jnp.allclose(loss2, ref2, atol=1e-4, rtol=1e-4), (loss2, ref2)

    # --- Test 3: multi class tiles, evenly divisible (statically unmasked) ----
    N3, C3 = 16, 256
    x3 = jax.random.normal(k5, (N3, C3), dtype=jnp.float32)
    target3 = jax.random.randint(k6, (N3,), 0, C3, dtype=jnp.int32)

    loss3 = jax.block_until_ready(
        label_smoothing_loss(x3, target3, smoothing, block_m=16, block_c=128))
    ref3 = _reference(x3, target3, smoothing)
    assert jnp.allclose(loss3, ref3, atol=1e-5, rtol=1e-5), (loss3, ref3)

    print("KERNEL_OK")
</pallas_src>

<mosaic_0001>
module attributes {stable_mosaic.version = 11 : i64} {
  func.func @_label_smoothing_kernel(%arg0: i32, %arg1: i32, %arg2: memref<16x32xf32, #tpu.memory_space<vmem>>, %arg3: memref<16x1xi32, #tpu.memory_space<vmem>>, %arg4: memref<16x1xf32, #tpu.memory_space<vmem>>, %arg5: memref<16x1xf32, #tpu.memory_space<vmem>>, %arg6: memref<16x1xf32, #tpu.memory_space<vmem>>, %arg7: memref<16x1xf32, #tpu.memory_space<vmem>>) attributes {dimension_semantics = [#tpu.dimension_semantics<parallel>, #tpu.dimension_semantics<arbitrary>], iteration_bounds = array<i64: 1, 1>, scalar_prefetch = 0 : i64, scratch_operands = 3 : i64, tpu.core_type = #tpu.core_type<tc>, window_params = [{transform_indices = @transform_0, window_bounds = array<i64: 16, 32>}, {transform_indices = @transform_1, window_bounds = array<i64: 16, 1>}, {transform_indices = @transform_2, window_bounds = array<i64: 16, 1>}]} {
    %c0_i32 = arith.constant 0 : i32
    %0 = arith.cmpi eq, %arg1, %c0_i32 : i32
    %1 = arith.extui %0 : i1 to i32
    %c0_i32_0 = arith.constant 0 : i32
    %2 = arith.cmpi ne, %1, %c0_i32_0 : i32
    scf.if %2 {
      %cst_22 = arith.constant 0xFF800000 : f32
      %39 = vector.broadcast %cst_22 : f32 to vector<16x1xf32>
      %c0_23 = arith.constant 0 : index
      %c0_24 = arith.constant 0 : index
      %40 = vector.load %arg5[%c0_23, %c0_24] : memref<16x1xf32, #tpu.memory_space<vmem>>, vector<16x1xf32>
      tpu.vector_store %arg5[%c0_23, %c0_24], %39 {strides = array<i32>} : memref<16x1xf32, #tpu.memory_space<vmem>>, vector<16x1xf32>,
      %cst_25 = arith.constant 0.000000e+00 : f32
      %41 = vector.broadcast %cst_25 : f32 to vector<16x1xf32>
      %c0_26 = arith.constant 0 : index
      %c0_27 = arith.constant 0 : index
      %42 = vector.load %arg6[%c0_26, %c0_27] : memref<16x1xf32, #tpu.memory_space<vmem>>, vector<16x1xf32>
      tpu.vector_store %arg6[%c0_26, %c0_27], %41 {strides = array<i32>} : memref<16x1xf32, #tpu.memory_space<vmem>>, vector<16x1xf32>,
      %cst_28 = arith.constant 0.000000e+00 : f32
      %43 = vector.broadcast %cst_28 : f32 to vector<16x1xf32>
      %c0_29 = arith.constant 0 : index
      %c0_30 = arith.constant 0 : index
      %44 = vector.load %arg7[%c0_29, %c0_30] : memref<16x1xf32, #tpu.memory_space<vmem>>, vector<16x1xf32>
      tpu.vector_store %arg7[%c0_29, %c0_30], %43 {strides = array<i32>} : memref<16x1xf32, #tpu.memory_space<vmem>>, vector<16x1xf32>,
    } else {
    }
    %c0 = arith.constant 0 : index
    %c0_1 = arith.constant 0 : index
    %3 = vector.load %arg2[%c0, %c0_1] : memref<16x32xf32, #tpu.memory_space<vmem>>, vector<16x32xf32>
    %c0_2 = arith.constant 0 : index
    %c0_3 = arith.constant 0 : index
    %4 = vector.load %arg3[%c0_2, %c0_3] : memref<16x1xi32, #tpu.memory_space<vmem>>, vector<16x1xi32>
    %c32_i32 = arith.constant 32 : i32
    %5 = arith.muli %arg1, %c32_i32 : i32
    %6 = vector.broadcast %5 : i32 to vector<16x1xi32>
    %7 = arith.subi %4, %6 : vector<16x1xi32>
    %8 = tpu.iota {dimensions = array<i32: 1>} : vector<16x32xi32>
    %c0_4 = arith.constant 0 : index
    %c0_5 = arith.constant 0 : index
    %9 = vector.load %arg5[%c0_4, %c0_5] : memref<16x1xf32, #tpu.memory_space<vmem>>, vector<16x1xf32>
    %cst = arith.constant dense<0xFF800000> : vector<16xf32>
    %10 = vector.multi_reduction <maximumf>, %3, %cst [1] : vector<16x32xf32> to vector<16xf32>
    %11 = vector.shape_cast %10 : vector<16xf32> to vector<16x1xf32>
    %12 = arith.maximumf %9, %11 : vector<16x1xf32>
    %13 = arith.subf %9, %12 : vector<16x1xf32>
    %14 = math.exp %13 : vector<16x1xf32>
    %c0_6 = arith.constant 0 : index
    %c0_7 = arith.constant 0 : index
    %15 = vector.load %arg6[%c0_6, %c0_7] : memref<16x1xf32, #tpu.memory_space<vmem>>, vector<16x1xf32>
    %16 = arith.mulf %14, %15 : vector<16x1xf32>
    %17 = vector.broadcast %12 : vector<16x1xf32> to vector<16x32xf32>
    %18 = arith.subf %3, %17 : vector<16x32xf32>
    %19 = math.exp %18 : vector<16x32xf32>
    %cst_8 = arith.constant dense<0.000000e+00> : vector<16xf32>
    %20 = vector.multi_reduction <add>, %19, %cst_8 [1] : vector<16x32xf32> to vector<16xf32>
    %21 = vector.shape_cast %20 : vector<16xf32> to vector<16x1xf32>
    %22 = arith.addf %16, %21 : vector<16x1xf32>
    %c0_9 = arith.constant 0 : index
    %c0_10 = arith.constant 0 : index
    %23 = vector.load %arg6[%c0_9, %c0_10] : memref<16x1xf32, #tpu.memory_space<vmem>>, vector<16x1xf32>
    tpu.vector_store %arg6[%c0_9, %c0_10], %22 {strides = array<i32>} : memref<16x1xf32, #tpu.memory_space<vmem>>, vector<16x1xf32>,
    %c0_11 = arith.constant 0 : index
    %c0_12 = arith.constant 0 : index
    %24 = vector.load %arg5[%c0_11, %c0_12] : memref<16x1xf32, #tpu.memory_space<vmem>>, vector<16x1xf32>
    tpu.vector_store %arg5[%c0_11, %c0_12], %12 {strides = array<i32>} : memref<16x1xf32, #tpu.memory_space<vmem>>, vector<16x1xf32>,
    %25 = vector.broadcast %7 : vector<16x1xi32> to vector<16x32xi32>
    %26 = arith.cmpi eq, %8, %25 : vector<16x32xi32>
    %cst_13 = arith.constant 0.903124988 : f32
    %cst_14 = arith.constant 3.125000e-03 : f32
    %27 = vector.broadcast %cst_13 : f32 to vector<16x32xf32>
    %28 = vector.broadcast %cst_14 : f32 to vector<16x32xf32>
    %29 = arith.select %26, %27, %28 : vector<16x32xi1>, vector<16x32xf32>
    %c0_15 = arith.constant 0 : index
    %c0_16 = arith.constant 0 : index
    %30 = vector.load %arg7[%c0_15, %c0_16] : memref<16x1xf32, #tpu.memory_space<vmem>>, vector<16x1xf32>
    %31 = arith.mulf %3, %29 : vector<16x32xf32>
    %cst_17 = arith.constant dense<0.000000e+00> : vector<16xf32>
    %32 = vector.multi_reduction <add>, %31, %cst_17 [1] : vector<16x32xf32> to vector<16xf32>
    %33 = vector.shape_cast %32 : vector<16xf32> to vector<16x1xf32>
    %34 = arith.addf %30, %33 : vector<16x1xf32>
    %c0_18 = arith.constant 0 : index
    %c0_19 = arith.constant 0 : index
    %35 = vector.load %arg7[%c0_18, %c0_19] : memref<16x1xf32, #tpu.memory_space<vmem>>, vector<16x1xf32>
    tpu.vector_store %arg7[%c0_18, %c0_19], %34 {strides = array<i32>} : memref<16x1xf32, #tpu.memory_space<vmem>>, vector<16x1xf32>,
    %c0_i32_20 = arith.constant 0 : i32
    %36 = arith.cmpi eq, %arg1, %c0_i32_20 : i32
    %37 = arith.extui %36 : i1 to i32
    %c0_i32_21 = arith.constant 0 : i32
    %38 = arith.cmpi ne, %37, %c0_i32_21 : i32
    scf.if %38 {
      %c0_22 = arith.constant 0 : index
      %c0_23 = arith.constant 0 : index
      %39 = vector.load %arg5[%c0_22, %c0_23] : memref<16x1xf32, #tpu.memory_space<vmem>>, vector<16x1xf32>
      %c0_24 = arith.constant 0 : index
      %c0_25 = arith.constant 0 : index
      %40 = vector.load %arg6[%c0_24, %c0_25] : memref<16x1xf32, #tpu.memory_space<vmem>>, vector<16x1xf32>
      %41 = math.log %40 : vector<16x1xf32>
      %42 = arith.addf %39, %41 : vector<16x1xf32>
      %c0_26 = arith.constant 0 : index
      %c0_27 = arith.constant 0 : index
      %43 = vector.load %arg7[%c0_26, %c0_27] : memref<16x1xf32, #tpu.memory_space<vmem>>, vector<16x1xf32>
      %44 = arith.subf %42, %43 : vector<16x1xf32>
      %c0_28 = arith.constant 0 : index
      %c0_29 = arith.constant 0 : index
      %45 = vector.load %arg4[%c0_28, %c0_29] : memref<16x1xf32, #tpu.memory_space<vmem>>, vector<16x1xf32>
      tpu.vector_store %arg4[%c0_28, %c0_29], %44 {strides = array<i32>} : memref<16x1xf32, #tpu.memory_space<vmem>>, vector<16x1xf32>,
    } else {
    }
    return
  }
  func.func @transform_0(%arg0: i32, %arg1: i32) -> (i32, i32) {
    %c0_i32 = arith.constant 0 : i32
    return %arg0, %arg1 : i32, i32
  }
  func.func @transform_1(%arg0: i32, %arg1: i32) -> (i32, i32) {
    %c0_i32 = arith.constant 0 : i32
    %c0_i32_0 = arith.constant 0 : i32
    return %arg0, %c0_i32 : i32, i32
  }
  func.func @transform_2(%arg0: i32, %arg1: i32) -> (i32, i32) {
    %c0_i32 = arith.constant 0 : i32
    %c0_i32_0 = arith.constant 0 : i32
    return %arg0, %c0_i32 : i32, i32
  }
}

</mosaic_0001>

<bundles_post_ra>
// kernel: tpu_custom_call.1
= control target key start
LH: loop header
LB: loop body
LE: loop exit
PB: predicated region body
PF: predicated region fallthrough
CT: control target
= control target key end

     0   :  { %vm34_vm0 = vcmask 261120   ;;  %vm15_vm1 = vcmask 7168   ;;  %v184_v4 = vmov -inf   ;;  %v185_v5 = vmov 0   ;;  %s237_s0 = inlined_call_operand.vmem [shape: f32[8,32], index: 0, kind: input, shape index: {}]   ;;  %s238_s1 = inlined_call_operand.vmem [shape: s32[8,1], index: 1, kind: input, shape index: {}]   ;;  %s239_s2 = inlined_call_operand.vmem [shape: f32[8,1], index: 2, kind: output, shape index: {}]  }
   0x1   :  { %v22_v0 = vld [vmem:[%s237_s0] sm:$0xff]  ;;  %v23_v1 = vld [vmem:[%s237_s0 + $0x8] sm:$0xff]  ;;  %16 = vst.msk [vmem:[#allocation2] sm:$0xff] %vm15_vm1, %v184_v4  ;;  %17 = vst.msk [vmem:[#allocation2 + $0x8] sm:$0xff] %vm15_vm1, %v184_v4  ;;  %170 = vset.pattern.permute.xlu1 %v185_v5  ;;  %171 = vset.pattern.permute.xlu0 %v185_v5  ;;  %v186_v6 = vmov 0.0   ;;  %v30_v17 = vlaneseq }
   0x2   :  { %v35_v2 = vsel %vm34_vm0, %v22_v0, -inf  ;;  %v38_v3 = vsel %vm34_vm0, %v23_v1, -inf  ;;  %18 = vst.msk [vmem:[#allocation3] sm:$0xff] %vm15_vm1, %v186_v6  ;;  %19 = vst.msk [vmem:[#allocation3 + $0x8] sm:$0xff] %vm15_vm1, %v186_v6  ;;  %v24_v7 = vld [vmem:[%s238_s1] sm:$0xff]  ;;  %v25_v16 = vld [vmem:[%s238_s1 + $0x8] sm:$0xff] }
   0x3   :  { %36 = vmax.xlane.f32.xlu0 %v35_v2  ;;  %20 = vst.msk [vmem:[#allocation4] sm:$0xff] %vm15_vm1, %v186_v6  ;;  %21 = vst.msk [vmem:[#allocation4 + $0x8] sm:$0xff] %vm15_vm1, %v186_v6  ;;  %v31_v18 = vand.u32 127, %v30_v17  ;;  %v187_v20 = vmov 0.003125  }
   0x7   :  { %39 = vmax.xlane.f32.xlu0 %v38_v3 }
   0x8   :  { %v32_v8 = vld [vmem:[#allocation2] sm:$0xff]  ;;  %v33_v11 = vld [vmem:[#allocation2 + $0x8] sm:$0xff] }
   0x9   :  { %v49_v44 = vld [vmem:[#allocation3] sm:$0xff]  ;;  %v50_v48 = vld [vmem:[#allocation3 + $0x8] sm:$0xff] }
   0xa   :  { %v92_v39 = vld [vmem:[#allocation4] sm:$0xff]  ;;  %v93_v53 = vld [vmem:[#allocation4 + $0x8] sm:$0xff] }
  0x1d   :  { %83 = vperm.xlu0 %171, %v24_v7  }
  0x8c   :  { %v37_v9 = vpop.xlane.xlu0 %36 }
  0x8d   :  { %v41_v10 = vmax.f32 %v32_v8, %v37_v9 }
  0x8f   :  { %v43_v12 = vsub.f32 %v32_v8, %v41_v10  ;;  %80 = vst.msk [vmem:[#allocation2] sm:$0xff] %vm15_vm1, %v41_v10  ;;  %55 = vperm.xlu1 %170, %v41_v10  }
  0x90   :  { %v40_v13 = vpop.xlane.xlu0 %39 }
  0x91   :  { %v42_v14 = vmax.f32 %v33_v11, %v40_v13  ;;  %v45_v41 = vmul.f32 1.442695, %v43_v12 }
  0x93   :  { %v44_v15 = vsub.f32 %v33_v11, %v42_v14  ;;  %81 = vst.msk [vmem:[#allocation2 + $0x8] sm:$0xff] %vm15_vm1, %v42_v14  ;;  %60 = vperm.xlu1 %170, %v42_v14  }
  0x95   :  { %v47_v42 = vmul.f32 1.442695, %v44_v15 }
  0x96   :  { %v109_v60 = vld [vmem:[#allocation2] sm:$0xff] }
  0x97   :  { %86 = vperm.xlu1 %170, %v25_v16  }
  0x98   :  { %v84_v19 = vpop.permute.xlu0 %83 }
  0x99   :  { %vm88_vm2 = vcmp.eq.s32.totalorder %v31_v18, %v84_v19 }
  0x9a   :  { %v90_v21 = vsel %vm88_vm2, 0.903125, %v187_v20 }
  0x9b   :  { %v94_v22 = vmul.f32 %v90_v21, %v22_v0 }
  0x9d   :  { %v96_v23 = vsel %vm34_vm0, %v94_v22, 0.0 }
  0x9e   :  { %97 = vadd.xlane.f32.xlu0 %v96_v23 }
 0x10a   :  { %v56_v24 = vpop.permute.xlu1 %55 }
 0x10b   :  { %v63_v25 = vsub.f32 %v22_v0, %v56_v24 }
 0x10d   :  { %v65_v26 = vmul.f32 1.442695, %v63_v25 }
 0x10e   :  { %v61_v27 = vpop.permute.xlu1 %60 }
 0x10f   :  { %172 = vpow2.f32 %v65_v26  ;;  %v64_v28 = vsub.f32 %v23_v1, %v61_v27 }
 0x111   :  { %v67_v29 = vmul.f32 1.442695, %v64_v28 }
 0x112   :  { %v87_v30 = vpop.permute.xlu1 %86 }
 0x113   :  { %174 = vpow2.f32 %v67_v29  ;;  %vm89_vm3 = vcmp.eq.s32.totalorder %v31_v18, %v87_v30 }
 0x114   :  { %v91_v33 = vsel %vm89_vm3, 0.903125, %v187_v20  ;;  %176 = vpow2.f32 %v45_v41 }
 0x115   :  { %v95_v36 = vmul.f32 %v91_v33, %v23_v1  ;;  %178 = vpow2.f32 %v47_v42 }
 0x117   :  { %v99_v37 = vsel %vm34_vm0, %v95_v36, 0.0 }
 0x11c   :  { %v173_v31 = vpop.eup %172 }
 0x11d   :  { %v69_v32 = vsel %vm34_vm0, %v173_v31, 0.0 }
 0x11e   :  { %70 = vadd.xlane.f32.xlu1 %v69_v32 }
 0x120   :  { %v175_v34 = vpop.eup %174 }
 0x121   :  { %v72_v35 = vsel %vm34_vm0, %v175_v34, 0.0  ;;  %v177_v43 = vpop.eup %176 }
 0x122   :  { %73 = vadd.xlane.f32.xlu1 %v72_v35  ;;  %v51_v45 = vmul.f32 %v177_v43, %v49_v44  ;;  %v179_v46 = vpop.eup %178 }
 0x123   :  { %v52_v50 = vmul.f32 %v179_v46, %v50_v48 }
 0x126   :  { %100 = vadd.xlane.f32.xlu1 %v99_v37 }
 0x127   :  { %v98_v38 = vpop.xlane.xlu0 %97 }
 0x128   :  { %v102_v40 = vadd.f32 %v98_v38, %v92_v39 }
 0x12a   :  { %104 = vst.msk [vmem:[#allocation4] sm:$0xff] %vm15_vm1, %v102_v40 }
 0x131   :  { %v119_v61 = vld [vmem:[#allocation4] sm:$0xff] }
 0x1a7   :  { %v71_v47 = vpop.xlane.xlu1 %70 }
 0x1a8   :  { %v75_v49 = vadd.f32 %v71_v47, %v51_v45 }
 0x1aa   :  { %78 = vst.msk [vmem:[#allocation3] sm:$0xff] %vm15_vm1, %v75_v49 }
 0x1ab   :  { %v74_v51 = vpop.xlane.xlu1 %73 }
 0x1ac   :  { %v76_v52 = vadd.f32 %v74_v51, %v52_v50 }
 0x1ae   :  { %79 = vst.msk [vmem:[#allocation3 + $0x8] sm:$0xff] %vm15_vm1, %v76_v52 }
 0x1af   :  { %v101_v54 = vpop.xlane.xlu1 %100 }
 0x1b0   :  { %v103_v55 = vadd.f32 %v101_v54, %v93_v53 }
 0x1b1   :  { %v111_v56 = vld [vmem:[#allocation3] sm:$0xff] }
 0x1b2   :  { %180 = vlog2.f32 %v111_v56  ;;  %105 = vst.msk [vmem:[#allocation4 + $0x8] sm:$0xff] %vm15_vm1, %v103_v55 }
 0x1b5   :  { %v112_v57 = vld [vmem:[#allocation3 + $0x8] sm:$0xff] }
 0x1b6   :  { %182 = vlog2.f32 %v112_v57 }
 0x1bf   :  { %v181_v58 = vpop.eup %180 }
 0x1c0   :  { %v114_v59 = vmul.f32 0.6931472, %v181_v58 }
 0x1c2   :  { %v117_v62 = vadd.f32 %v114_v59, %v109_v60 }
 0x1c3   :  { %v183_v63 = vpop.eup %182 }
 0x1c4   :  { %v121_v0 = vsub.f32 %v117_v62, %v119_v61 }
 0x1c6   :  { %123 = vst.msk [vmem:[#allocation5] sm:$0xff] %vm15_vm1, %v121_v0 }
 0x1cd   :  { %v155_v1 = vld [vmem:[#allocation5] sm:$0xff] }
 0x1ce   :  { %156 = vst [vmem:[%s239_s2] sm:$0xff] %v155_v1 }

</bundles_post_ra>
